<compile_context>
chip_gen: v6e
topology: v6e:2x2x1
jax: 0.10.0
libtpu: 0.0.40
codegen_flags: <defaults>
</compile_context>

<pallas_src>
import functools

import jax
import jax.numpy as jnp
from jax import lax
from jax.experimental import pallas as pl
from jax.experimental.pallas import tpu as pltpu


_SIGMA = 1.0
_ALPHA = 0.7
_EPS = 1e-07

# Final scaling factors from the PyTorch forward's return statement:
# (category, confidence, class, instance_x, instance_y, heading_x, heading_y, height)
_LOSS_SCALES = (0.1, 0.2, 0.2, 0.15, 0.15, 0.05, 0.05, 0.1)


def _round_up(x, m):
    return ((x + m - 1) // m) * m


def _cdiv(a, b):
    return -(-a // b)


def _huber(d):
    # NOTE: the PyTorch reference uses `d <= sigma` (NOT |d| <= sigma); replicate exactly.
    return jnp.where(d <= _SIGMA, 0.5 * d * d, _SIGMA * jnp.abs(d) - 0.5 * _SIGMA * _SIGMA)


def _bcnn_loss_kernel(o_ref, t_ref, w_ref, loss_ref, *,
                      cr, n_chunks, ns, tr, r_valid, needs_mask, unroll):
    """Blocks: o/t (12, tr, 128), w (5, tr, 128); loss (1, 8) resident over the row axis."""
    p = pl.program_id(0)          # spatial split (dual-TC when B == 1)
    s = pl.program_id(2)          # spatial row-block (accumulation axis)

    @pl.when(s == 0)
    def _init():
        loss_ref[...] = jnp.zeros_like(loss_ref)

    # Logical (un-clamped) global row index of this block's first row.
    blk_row0 = (p * ns + s) * tr
    if needs_mask:
        row_iota = lax.broadcasted_iota(jnp.int32, (cr, 128), 0)

    def chunk_body(c, accs):
        a0, a1, a2, a3, a4, a5, a6, a7 = accs
        r0 = pl.multiple_of(c * cr, cr)

        def ch(ref, k):
            # (cr, 128) full-sublane slice of channel k, upcast to f32.
            return ref[k, pl.ds(r0, cr), :].astype(jnp.float32)

        if needs_mask:
            # Rows >= r_valid hold garbage from the partial / clamped block read.
            # Zero them with a select AFTER the math: select is NaN/Inf safe, so
            # garbage data (even NaN bit patterns) cannot poison the accumulators.
            valid = row_iota < (r_valid - blk_row0 - r0)
            keep = lambda x: jnp.where(valid, x, 0.0)
        else:
            keep = lambda x: x

        t0 = ch(t_ref, 0)  # target channel 0: weighting map

        # term 0: category (unweighted huber on channel 0)
        a0 = a0 + keep(_huber(ch(o_ref, 0) - t0))
        # term 1: confidence (unweighted huber on channel 3)
        a1 = a1 + keep(_huber(ch(o_ref, 3) - ch(t_ref, 3)))

        # term 2: focal class loss over channels 4..8 weighted by class_weight.
        cls = None
        for k in range(5):
            oc = ch(o_ref, 4 + k)
            tc = ch(t_ref, 4 + k)
            one_m = 1.0 - oc
            focal = ((one_m * one_m) * (tc * jnp.log(oc + _EPS)) * _ALPHA
                     + (oc * oc) * ((1.0 - tc) * jnp.log(1.0 - oc + _EPS)) * (1.0 - _ALPHA))
            term = ch(w_ref, k) * focal
            cls = term if cls is None else cls + term
        a2 = a2 - keep(cls)

        # terms 3..7: t0-weighted huber on channels 1, 2, 9, 10, 11
        a3 = a3 + keep(_huber(ch(o_ref, 1) - ch(t_ref, 1)) * t0)
        a4 = a4 + keep(_huber(ch(o_ref, 2) - ch(t_ref, 2)) * t0)
        a5 = a5 + keep(_huber(ch(o_ref, 9) - ch(t_ref, 9)) * t0)
        a6 = a6 + keep(_huber(ch(o_ref, 10) - ch(t_ref, 10)) * t0)
        a7 = a7 + keep(_huber(ch(o_ref, 11) - ch(t_ref, 11)) * t0)
        return (a0, a1, a2, a3, a4, a5, a6, a7)

    zero = jnp.zeros((cr, 128), jnp.float32)
    accs = lax.fori_loop(0, n_chunks, chunk_body, (zero,) * 8, unroll=unroll)

    # Collapse the 8 register accumulators to scalars once per grid step (XLU is
    # otherwise idle) and fold into the resident (1, 8) per-(split, batch) output.
    partial = jnp.stack([jnp.sum(a) for a in accs])          # (8,)
    loss_ref[0, :] = loss_ref[0, :] + partial


def bcnn_loss(output, input_, target, category_weight, confidence_weight,
              class_weight, *, tile_rows=512, unroll=2):
    """Pallas implementation of BcnnLossNew.forward.

    output, target: (B, C, H, W) with C >= 12.  class_weight: (B, 5, H, W).
    input_, category_weight, confidence_weight are unused (as in the module).
    Returns a tuple of 8 scalar losses.
    """
    del input_, category_weight, confidence_weight  # dead args in the reference forward
    B, C, H, W = output.shape
    assert C >= 12, "BcnnLoss uses output/target channels 0..11"
    assert class_weight.shape == (B, 5, H, W)

    S = H * W
    if C > 12:
        # TODO(synk): for C >= 16 a 16-channel block read would avoid this slice copy.
        output = output[:, :12]
        target = target[:, :12]

    # Reshape the spatial axis to (rows, 128).  Free when S % 128 == 0; otherwise a
    # single minimal zero-pad (padded elements contribute exactly 0 to every term).
    if S % 128 == 0:
        R = S // 128
        out4 = output.reshape(B, 12, R, 128)
        tgt4 = target.reshape(B, 12, R, 128)
        cw4 = class_weight.reshape(B, 5, R, 128)
    else:
        s_pad = _round_up(S, 128)
        R = s_pad // 128
        pad = ((0, 0), (0, 0), (0, s_pad - S))
        out4 = jnp.pad(output.reshape(B, 12, S), pad).reshape(B, 12, R, 128)
        tgt4 = jnp.pad(target.reshape(B, 12, S), pad).reshape(B, 12, R, 128)
        cw4 = jnp.pad(class_weight.reshape(B, 5, S), pad).reshape(B, 5, R, 128)

    # Row tile: multiple of 8 and <= R (or the full R when R < 8), so every block
    # start is in-bounds; only the last block may be partial (masked in-kernel).
    if R >= 8:
        tr = max(8, min(_round_up(tile_rows, 8), (R // 8) * 8))
        cr = 8
    else:
        tr = R
        cr = R
    n_chunks = tr // cr

    nblk = _cdiv(R, tr)                                # real row-blocks
    nsplit = 2 if (B == 1 and nblk >= 2) else 1        # dual-TC split for B == 1 (v7x)
    ns = _cdiv(nblk, nsplit)                           # row-blocks per split
    needs_mask = (nsplit * ns * tr != R)               # any logical row >= R anywhere

    def in_map(p, b, s):
        # Clamp so no DMA is ever issued fully out of bounds; over-covered rows
        # are zeroed by the in-kernel mask (their logical row index is >= R).
        rb = jnp.minimum(p * ns + s, nblk - 1)
        return (b, 0, rb, 0)

    kernel = functools.partial(
        _bcnn_loss_kernel, cr=cr, n_chunks=n_chunks, ns=ns, tr=tr,
        r_valid=R, needs_mask=needs_mask, unroll=max(1, min(unroll, n_chunks)))

    # Size the VMEM limit to the real double-buffered input footprint + margin.
    blk_bytes = tr * 128 * (12 * out4.dtype.itemsize
                            + 12 * tgt4.dtype.itemsize
                            + 5 * cw4.dtype.itemsize)
    vmem_limit = int(min(100 * 1024 * 1024, 2 * blk_bytes + 8 * 1024 * 1024))

    sums = pl.pallas_call(
        kernel,
        out_shape=jax.ShapeDtypeStruct((nsplit * B, 1, 8), jnp.float32),
        grid_spec=pltpu.PrefetchScalarGridSpec(
            num_scalar_prefetch=0,
            grid=(nsplit, B, ns),
            in_specs=[
                pl.BlockSpec((None, 12, tr, 128), in_map),
                pl.BlockSpec((None, 12, tr, 128), in_map),
                pl.BlockSpec((None, 5, tr, 128), in_map),
            ],
            out_specs=pl.BlockSpec((None, 1, 8), lambda p, b, s: (p * B + b, 0, 0)),
        ),
        compiler_params=pltpu.CompilerParams(
            # split & batch axes are independent -> shard across TCs on v7x;
            # the row-block axis is the accumulation axis.
            dimension_semantics=("parallel", "parallel", "arbitrary"),
            vmem_limit_bytes=vmem_limit,
        ),
    )(out4, tgt4, cw4)

    totals = jnp.sum(sums, axis=(0, 1))                # (8,) sum of per-(split,batch) partials
    scaled = totals * jnp.asarray(_LOSS_SCALES, jnp.float32)
    return tuple(scaled[i] for i in range(8))


def _reference(output, target, class_weight):
    """Pure-JAX reference mirroring the PyTorch forward, for verification."""
    t0 = target[:, 0]
    cat = jnp.sum(_huber(output[:, 0] - target[:, 0]))
    conf = jnp.sum(_huber(output[:, 3] - target[:, 3]))
    oc, tc = output[:, 4:9], target[:, 4:9]
    cls = -jnp.sum(class_weight * ((1.0 - oc) ** 2.0 * (tc * jnp.log(oc + _EPS)) * _ALPHA
                                   + oc ** 2.0 * ((1.0 - tc) * jnp.log(1.0 - oc + _EPS))
                                   * (1.0 - _ALPHA)))
    ix = jnp.sum(_huber(output[:, 1] - target[:, 1]) * t0)
    iy = jnp.sum(_huber(output[:, 2] - target[:, 2]) * t0)
    hx = jnp.sum(_huber(output[:, 9] - target[:, 9]) * t0)
    hy = jnp.sum(_huber(output[:, 10] - target[:, 10]) * t0)
    hh = jnp.sum(_huber(output[:, 11] - target[:, 11]) * t0)
    return (cat * 0.1, conf * 0.2, cls * 0.2, ix * 0.15, iy * 0.15,
            hx * 0.05, hy * 0.05, hh * 0.1)


def _run_case(key, B, C, H, W, rtol=5e-4, atol=5e-4):
    k1, k2, k3, k4 = jax.random.split(key, 4)
    # outputs in (0, 1) so the focal-loss log terms stay finite.
    output = jax.random.uniform(k1, (B, C, H, W), jnp.float32, 0.05, 0.95)
    target = jax.random.uniform(k2, (B, C, H, W), jnp.float32, 0.0, 1.0)
    input_ = jax.random.normal(k3, (B, C, H, W), jnp.float32)           # unused by forward
    class_weight = jax.random.uniform(k4, (B, 5, H, W), jnp.float32, 0.5, 1.5)
    category_weight = jnp.ones((B, H, W), jnp.float32)                  # unused by forward
    confidence_weight = jnp.ones((B, H, W), jnp.float32)                # unused by forward

    losses = bcnn_loss(output, input_, target, category_weight,
                       confidence_weight, class_weight)
    losses = jax.block_until_ready(losses)

    ref = _reference(output, target, class_weight)
    for got, want in zip(losses, ref):
        assert jnp.allclose(got, want, rtol=rtol, atol=atol), (got, want)


if __name__ == "__main__":
    key = jax.random.PRNGKey(0)
    k_a, k_b, k_c = jax.random.split(key, 3)
    # S % 128 == 0: fully copy-free wrapper path (S = 256 -> 2 rows of 128).
    _run_case(k_a, B=2, C=12, H=16, W=16)
    # Non-aligned spatial size + extra channels: pad / slice fallback path.
    _run_case(k_b, B=2, C=13, H=10, W=10)
    # B == 1 with multiple row-blocks: dual-TC spatial split + tail row mask.
    _run_case(k_c, B=1, C=12, H=48, W=48)
    print("KERNEL_OK")
</pallas_src>

<mosaic_0001>
module attributes {stable_mosaic.version = 11 : i64} {
  func.func @_bcnn_loss_kernel(%arg0: i32, %arg1: i32, %arg2: i32, %arg3: memref<1x12x2x128xf32, #tpu.memory_space<vmem>>, %arg4: memref<1x12x2x128xf32, #tpu.memory_space<vmem>>, %arg5: memref<1x5x2x128xf32, #tpu.memory_space<vmem>>, %arg6: memref<1x1x8xf32, #tpu.memory_space<vmem>>) attributes {dimension_semantics = [#tpu.dimension_semantics<parallel>, #tpu.dimension_semantics<parallel>, #tpu.dimension_semantics<arbitrary>], iteration_bounds = array<i64: 1, 2, 1>, scalar_prefetch = 0 : i64, scratch_operands = 0 : i64, tpu.core_type = #tpu.core_type<tc>, window_params = [{transform_indices = @transform_0, window_bounds = array<i64: 1, 12, 2, 128>}, {transform_indices = @transform_1, window_bounds = array<i64: 1, 12, 2, 128>}, {transform_indices = @transform_2, window_bounds = array<i64: 1, 5, 2, 128>}, {transform_indices = @transform_3, window_bounds = array<i64: 1, 1, 8>}]} {
    %c0_i32 = arith.constant 0 : i32
    %0 = arith.cmpi eq, %arg2, %c0_i32 : i32
    %1 = arith.extui %0 : i1 to i32
    %c0_i32_0 = arith.constant 0 : i32
    %2 = arith.cmpi ne, %1, %c0_i32_0 : i32
    scf.if %2 {
      %cst_154 = arith.constant 0.000000e+00 : f32
      %361 = vector.broadcast %cst_154 : f32 to vector<1x8xf32>
      %c0_155 = arith.constant 0 : index
      %c0_156 = arith.constant 0 : index
      %c0_157 = arith.constant 0 : index
      %362 = vector.load %arg6[%c0_155, %c0_156, %c0_157] : memref<1x1x8xf32, #tpu.memory_space<vmem>>, vector<1x1x8xf32>
      %363 = vector.shape_cast %362 : vector<1x1x8xf32> to vector<1x8xf32>
      %364 = vector.shape_cast %361 : vector<1x8xf32> to vector<1x1x8xf32>
      tpu.vector_store %arg6[%c0_155, %c0_156, %c0_157], %364 {strides = array<i32>} : memref<1x1x8xf32, #tpu.memory_space<vmem>>, vector<1x1x8xf32>,
    } else {
    }
    %cst = arith.constant 0.000000e+00 : f32
    %3 = vector.broadcast %cst : f32 to vector<2x128xf32>
    %c0_i32_1 = arith.constant 0 : i32
    %c2_i32 = arith.constant 2 : i32
    %4 = arith.muli %c0_i32_1, %c2_i32 : i32
    %5 = tpu.assume_multiple %4, 2 : i32
    %c0 = arith.constant 0 : index
    %c0_2 = arith.constant 0 : index
    %6 = arith.index_cast %5 : i32 to index
    %c0_3 = arith.constant 0 : index
    %7 = vector.load %arg4[%c0, %c0_2, %6, %c0_3] : memref<1x12x2x128xf32, #tpu.memory_space<vmem>>, vector<1x1x2x128xf32>
    %8 = vector.shape_cast %7 : vector<1x1x2x128xf32> to vector<2x128xf32>
    %c0_4 = arith.constant 0 : index
    %c0_5 = arith.constant 0 : index
    %9 = arith.index_cast %5 : i32 to index
    %c0_6 = arith.constant 0 : index
    %10 = vector.load %arg3[%c0_4, %c0_5, %9, %c0_6] : memref<1x12x2x128xf32, #tpu.memory_space<vmem>>, vector<1x1x2x128xf32>
    %11 = vector.shape_cast %10 : vector<1x1x2x128xf32> to vector<2x128xf32>
    %12 = arith.subf %11, %8 : vector<2x128xf32>
    %cst_7 = arith.constant 1.000000e+00 : f32
    %13 = vector.broadcast %cst_7 : f32 to vector<2x128xf32>
    %14 = arith.cmpf ole, %12, %13 : vector<2x128xf32>
    %cst_8 = arith.constant 5.000000e-01 : f32
    %15 = vector.broadcast %cst_8 : f32 to vector<2x128xf32>
    %16 = arith.mulf %15, %12 : vector<2x128xf32>
    %17 = arith.mulf %16, %12 : vector<2x128xf32>
    %18 = math.absf %12 : vector<2x128xf32>
    %cst_9 = arith.constant 1.000000e+00 : f32
    %19 = vector.broadcast %cst_9 : f32 to vector<2x128xf32>
    %20 = arith.mulf %19, %18 : vector<2x128xf32>
    %cst_10 = arith.constant 5.000000e-01 : f32
    %21 = vector.broadcast %cst_10 : f32 to vector<2x128xf32>
    %22 = arith.subf %20, %21 : vector<2x128xf32>
    %23 = arith.select %14, %17, %22 : vector<2x128xi1>, vector<2x128xf32>
    %24 = arith.addf %3, %23 : vector<2x128xf32>
    %c0_11 = arith.constant 0 : index
    %c3 = arith.constant 3 : index
    %25 = arith.index_cast %5 : i32 to index
    %c0_12 = arith.constant 0 : index
    %26 = vector.load %arg3[%c0_11, %c3, %25, %c0_12] : memref<1x12x2x128xf32, #tpu.memory_space<vmem>>, vector<1x1x2x128xf32>
    %27 = vector.shape_cast %26 : vector<1x1x2x128xf32> to vector<2x128xf32>
    %c0_13 = arith.constant 0 : index
    %c3_14 = arith.constant 3 : index
    %28 = arith.index_cast %5 : i32 to index
    %c0_15 = arith.constant 0 : index
    %29 = vector.load %arg4[%c0_13, %c3_14, %28, %c0_15] : memref<1x12x2x128xf32, #tpu.memory_space<vmem>>, vector<1x1x2x128xf32>
    %30 = vector.shape_cast %29 : vector<1x1x2x128xf32> to vector<2x128xf32>
    %31 = arith.subf %27, %30 : vector<2x128xf32>
    %cst_16 = arith.constant 1.000000e+00 : f32
    %32 = vector.broadcast %cst_16 : f32 to vector<2x128xf32>
    %33 = arith.cmpf ole, %31, %32 : vector<2x128xf32>
    %cst_17 = arith.constant 5.000000e-01 : f32
    %34 = vector.broadcast %cst_17 : f32 to vector<2x128xf32>
    %35 = arith.mulf %34, %31 : vector<2x128xf32>
    %36 = arith.mulf %35, %31 : vector<2x128xf32>
    %37 = math.absf %31 : vector<2x128xf32>
    %cst_18 = arith.constant 1.000000e+00 : f32
    %38 = vector.broadcast %cst_18 : f32 to vector<2x128xf32>
    %39 = arith.mulf %38, %37 : vector<2x128xf32>
    %cst_19 = arith.constant 5.000000e-01 : f32
    %40 = vector.broadcast %cst_19 : f32 to vector<2x128xf32>
    %41 = arith.subf %39, %40 : vector<2x128xf32>
    %42 = arith.select %33, %36, %41 : vector<2x128xi1>, vector<2x128xf32>
    %43 = arith.addf %3, %42 : vector<2x128xf32>
    %c0_20 = arith.constant 0 : index
    %c4 = arith.constant 4 : index
    %44 = arith.index_cast %5 : i32 to index
    %c0_21 = arith.constant 0 : index
    %45 = vector.load %arg3[%c0_20, %c4, %44, %c0_21] : memref<1x12x2x128xf32, #tpu.memory_space<vmem>>, vector<1x1x2x128xf32>
    %46 = vector.shape_cast %45 : vector<1x1x2x128xf32> to vector<2x128xf32>
    %c0_22 = arith.constant 0 : index
    %c4_23 = arith.constant 4 : index
    %47 = arith.index_cast %5 : i32 to index
    %c0_24 = arith.constant 0 : index
    %48 = vector.load %arg4[%c0_22, %c4_23, %47, %c0_24] : memref<1x12x2x128xf32, #tpu.memory_space<vmem>>, vector<1x1x2x128xf32>
    %49 = vector.shape_cast %48 : vector<1x1x2x128xf32> to vector<2x128xf32>
    %cst_25 = arith.constant 1.000000e+00 : f32
    %50 = vector.broadcast %cst_25 : f32 to vector<2x128xf32>
    %51 = arith.subf %50, %46 : vector<2x128xf32>
    %52 = arith.mulf %51, %51 : vector<2x128xf32>
    %cst_26 = arith.constant 1.000000e-07 : f32
    %53 = vector.broadcast %cst_26 : f32 to vector<2x128xf32>
    %54 = arith.addf %46, %53 : vector<2x128xf32>
    %55 = math.log %54 : vector<2x128xf32>
    %56 = arith.mulf %49, %55 : vector<2x128xf32>
    %57 = arith.mulf %52, %56 : vector<2x128xf32>
    %cst_27 = arith.constant 0.699999988 : f32
    %58 = vector.broadcast %cst_27 : f32 to vector<2x128xf32>
    %59 = arith.mulf %57, %58 : vector<2x128xf32>
    %60 = arith.mulf %46, %46 : vector<2x128xf32>
    %cst_28 = arith.constant 1.000000e+00 : f32
    %61 = vector.broadcast %cst_28 : f32 to vector<2x128xf32>
    %62 = arith.subf %61, %49 : vector<2x128xf32>
    %cst_29 = arith.constant 1.000000e+00 : f32
    %63 = vector.broadcast %cst_29 : f32 to vector<2x128xf32>
    %64 = arith.subf %63, %46 : vector<2x128xf32>
    %cst_30 = arith.constant 1.000000e-07 : f32
    %65 = vector.broadcast %cst_30 : f32 to vector<2x128xf32>
    %66 = arith.addf %64, %65 : vector<2x128xf32>
    %67 = math.log %66 : vector<2x128xf32>
    %68 = arith.mulf %62, %67 : vector<2x128xf32>
    %69 = arith.mulf %60, %68 : vector<2x128xf32>
    %cst_31 = arith.constant 3.000000e-01 : f32
    %70 = vector.broadcast %cst_31 : f32 to vector<2x128xf32>
    %71 = arith.mulf %69, %70 : vector<2x128xf32>
    %72 = arith.addf %59, %71 : vector<2x128xf32>
    %c0_32 = arith.constant 0 : index
    %c0_33 = arith.constant 0 : index
    %73 = arith.index_cast %5 : i32 to index
    %c0_34 = arith.constant 0 : index
    %74 = vector.load %arg5[%c0_32, %c0_33, %73, %c0_34] : memref<1x5x2x128xf32, #tpu.memory_space<vmem>>, vector<1x1x2x128xf32>
    %75 = vector.shape_cast %74 : vector<1x1x2x128xf32> to vector<2x128xf32>
    %76 = arith.mulf %75, %72 : vector<2x128xf32>
    %c0_35 = arith.constant 0 : index
    %c5 = arith.constant 5 : index
    %77 = arith.index_cast %5 : i32 to index
    %c0_36 = arith.constant 0 : index
    %78 = vector.load %arg3[%c0_35, %c5, %77, %c0_36] : memref<1x12x2x128xf32, #tpu.memory_space<vmem>>, vector<1x1x2x128xf32>
    %79 = vector.shape_cast %78 : vector<1x1x2x128xf32> to vector<2x128xf32>
    %c0_37 = arith.constant 0 : index
    %c5_38 = arith.constant 5 : index
    %80 = arith.index_cast %5 : i32 to index
    %c0_39 = arith.constant 0 : index
    %81 = vector.load %arg4[%c0_37, %c5_38, %80, %c0_39] : memref<1x12x2x128xf32, #tpu.memory_space<vmem>>, vector<1x1x2x128xf32>
    %82 = vector.shape_cast %81 : vector<1x1x2x128xf32> to vector<2x128xf32>
    %cst_40 = arith.constant 1.000000e+00 : f32
    %83 = vector.broadcast %cst_40 : f32 to vector<2x128xf32>
    %84 = arith.subf %83, %79 : vector<2x128xf32>
    %85 = arith.mulf %84, %84 : vector<2x128xf32>
    %cst_41 = arith.constant 1.000000e-07 : f32
    %86 = vector.broadcast %cst_41 : f32 to vector<2x128xf32>
    %87 = arith.addf %79, %86 : vector<2x128xf32>
    %88 = math.log %87 : vector<2x128xf32>
    %89 = arith.mulf %82, %88 : vector<2x128xf32>
    %90 = arith.mulf %85, %89 : vector<2x128xf32>
    %cst_42 = arith.constant 0.699999988 : f32
    %91 = vector.broadcast %cst_42 : f32 to vector<2x128xf32>
    %92 = arith.mulf %90, %91 : vector<2x128xf32>
    %93 = arith.mulf %79, %79 : vector<2x128xf32>
    %cst_43 = arith.constant 1.000000e+00 : f32
    %94 = vector.broadcast %cst_43 : f32 to vector<2x128xf32>
    %95 = arith.subf %94, %82 : vector<2x128xf32>
    %cst_44 = arith.constant 1.000000e+00 : f32
    %96 = vector.broadcast %cst_44 : f32 to vector<2x128xf32>
    %97 = arith.subf %96, %79 : vector<2x128xf32>
    %cst_45 = arith.constant 1.000000e-07 : f32
    %98 = vector.broadcast %cst_45 : f32 to vector<2x128xf32>
    %99 = arith.addf %97, %98 : vector<2x128xf32>
    %100 = math.log %99 : vector<2x128xf32>
    %101 = arith.mulf %95, %100 : vector<2x128xf32>
    %102 = arith.mulf %93, %101 : vector<2x128xf32>
    %cst_46 = arith.constant 3.000000e-01 : f32
    %103 = vector.broadcast %cst_46 : f32 to vector<2x128xf32>
    %104 = arith.mulf %102, %103 : vector<2x128xf32>
    %105 = arith.addf %92, %104 : vector<2x128xf32>
    %c0_47 = arith.constant 0 : index
    %c1 = arith.constant 1 : index
    %106 = arith.index_cast %5 : i32 to index
    %c0_48 = arith.constant 0 : index
    %107 = vector.load %arg5[%c0_47, %c1, %106, %c0_48] : memref<1x5x2x128xf32, #tpu.memory_space<vmem>>, vector<1x1x2x128xf32>
    %108 = vector.shape_cast %107 : vector<1x1x2x128xf32> to vector<2x128xf32>
    %109 = arith.mulf %108, %105 : vector<2x128xf32>
    %110 = arith.addf %76, %109 : vector<2x128xf32>
    %c0_49 = arith.constant 0 : index
    %c6 = arith.constant 6 : index
    %111 = arith.index_cast %5 : i32 to index
    %c0_50 = arith.constant 0 : index
    %112 = vector.load %arg3[%c0_49, %c6, %111, %c0_50] : memref<1x12x2x128xf32, #tpu.memory_space<vmem>>, vector<1x1x2x128xf32>
    %113 = vector.shape_cast %112 : vector<1x1x2x128xf32> to vector<2x128xf32>
    %c0_51 = arith.constant 0 : index
    %c6_52 = arith.constant 6 : index
    %114 = arith.index_cast %5 : i32 to index
    %c0_53 = arith.constant 0 : index
    %115 = vector.load %arg4[%c0_51, %c6_52, %114, %c0_53] : memref<1x12x2x128xf32, #tpu.memory_space<vmem>>, vector<1x1x2x128xf32>
    %116 = vector.shape_cast %115 : vector<1x1x2x128xf32> to vector<2x128xf32>
    %cst_54 = arith.constant 1.000000e+00 : f32
    %117 = vector.broadcast %cst_54 : f32 to vector<2x128xf32>
    %118 = arith.subf %117, %113 : vector<2x128xf32>
    %119 = arith.mulf %118, %118 : vector<2x128xf32>
    %cst_55 = arith.constant 1.000000e-07 : f32
    %120 = vector.broadcast %cst_55 : f32 to vector<2x128xf32>
    %121 = arith.addf %113, %120 : vector<2x128xf32>
    %122 = math.log %121 : vector<2x128xf32>
    %123 = arith.mulf %116, %122 : vector<2x128xf32>
    %124 = arith.mulf %119, %123 : vector<2x128xf32>
    %cst_56 = arith.constant 0.699999988 : f32
    %125 = vector.broadcast %cst_56 : f32 to vector<2x128xf32>
    %126 = arith.mulf %124, %125 : vector<2x128xf32>
    %127 = arith.mulf %113, %113 : vector<2x128xf32>
    %cst_57 = arith.constant 1.000000e+00 : f32
    %128 = vector.broadcast %cst_57 : f32 to vector<2x128xf32>
    %129 = arith.subf %128, %116 : vector<2x128xf32>
    %cst_58 = arith.constant 1.000000e+00 : f32
    %130 = vector.broadcast %cst_58 : f32 to vector<2x128xf32>
    %131 = arith.subf %130, %113 : vector<2x128xf32>
    %cst_59 = arith.constant 1.000000e-07 : f32
    %132 = vector.broadcast %cst_59 : f32 to vector<2x128xf32>
    %133 = arith.addf %131, %132 : vector<2x128xf32>
    %134 = math.log %133 : vector<2x128xf32>
    %135 = arith.mulf %129, %134 : vector<2x128xf32>
    %136 = arith.mulf %127, %135 : vector<2x128xf32>
    %cst_60 = arith.constant 3.000000e-01 : f32
    %137 = vector.broadcast %cst_60 : f32 to vector<2x128xf32>
    %138 = arith.mulf %136, %137 : vector<2x128xf32>
    %139 = arith.addf %126, %138 : vector<2x128xf32>
    %c0_61 = arith.constant 0 : index
    %c2 = arith.constant 2 : index
    %140 = arith.index_cast %5 : i32 to index
    %c0_62 = arith.constant 0 : index
    %141 = vector.load %arg5[%c0_61, %c2, %140, %c0_62] : memref<1x5x2x128xf32, #tpu.memory_space<vmem>>, vector<1x1x2x128xf32>
    %142 = vector.shape_cast %141 : vector<1x1x2x128xf32> to vector<2x128xf32>
    %143 = arith.mulf %142, %139 : vector<2x128xf32>
    %144 = arith.addf %110, %143 : vector<2x128xf32>
    %c0_63 = arith.constant 0 : index
    %c7 = arith.constant 7 : index
    %145 = arith.index_cast %5 : i32 to index
    %c0_64 = arith.constant 0 : index
    %146 = vector.load %arg3[%c0_63, %c7, %145, %c0_64] : memref<1x12x2x128xf32, #tpu.memory_space<vmem>>, vector<1x1x2x128xf32>
    %147 = vector.shape_cast %146 : vector<1x1x2x128xf32> to vector<2x128xf32>
    %c0_65 = arith.constant 0 : index
    %c7_66 = arith.constant 7 : index
    %148 = arith.index_cast %5 : i32 to index
    %c0_67 = arith.constant 0 : index
    %149 = vector.load %arg4[%c0_65, %c7_66, %148, %c0_67] : memref<1x12x2x128xf32, #tpu.memory_space<vmem>>, vector<1x1x2x128xf32>
    %150 = vector.shape_cast %149 : vector<1x1x2x128xf32> to vector<2x128xf32>
    %cst_68 = arith.constant 1.000000e+00 : f32
    %151 = vector.broadcast %cst_68 : f32 to vector<2x128xf32>
    %152 = arith.subf %151, %147 : vector<2x128xf32>
    %153 = arith.mulf %152, %152 : vector<2x128xf32>
    %cst_69 = arith.constant 1.000000e-07 : f32
    %154 = vector.broadcast %cst_69 : f32 to vector<2x128xf32>
    %155 = arith.addf %147, %154 : vector<2x128xf32>
    %156 = math.log %155 : vector<2x128xf32>
    %157 = arith.mulf %150, %156 : vector<2x128xf32>
    %158 = arith.mulf %153, %157 : vector<2x128xf32>
    %cst_70 = arith.constant 0.699999988 : f32
    %159 = vector.broadcast %cst_70 : f32 to vector<2x128xf32>
    %160 = arith.mulf %158, %159 : vector<2x128xf32>
    %161 = arith.mulf %147, %147 : vector<2x128xf32>
    %cst_71 = arith.constant 1.000000e+00 : f32
    %162 = vector.broadcast %cst_71 : f32 to vector<2x128xf32>
    %163 = arith.subf %162, %150 : vector<2x128xf32>
    %cst_72 = arith.constant 1.000000e+00 : f32
    %164 = vector.broadcast %cst_72 : f32 to vector<2x128xf32>
    %165 = arith.subf %164, %147 : vector<2x128xf32>
    %cst_73 = arith.constant 1.000000e-07 : f32
    %166 = vector.broadcast %cst_73 : f32 to vector<2x128xf32>
    %167 = arith.addf %165, %166 : vector<2x128xf32>
    %168 = math.log %167 : vector<2x128xf32>
    %169 = arith.mulf %163, %168 : vector<2x128xf32>
    %170 = arith.mulf %161, %169 : vector<2x128xf32>
    %cst_74 = arith.constant 3.000000e-01 : f32
    %171 = vector.broadcast %cst_74 : f32 to vector<2x128xf32>
    %172 = arith.mulf %170, %171 : vector<2x128xf32>
    %173 = arith.addf %160, %172 : vector<2x128xf32>
    %c0_75 = arith.constant 0 : index
    %c3_76 = arith.constant 3 : index
    %174 = arith.index_cast %5 : i32 to index
    %c0_77 = arith.constant 0 : index
    %175 = vector.load %arg5[%c0_75, %c3_76, %174, %c0_77] : memref<1x5x2x128xf32, #tpu.memory_space<vmem>>, vector<1x1x2x128xf32>
    %176 = vector.shape_cast %175 : vector<1x1x2x128xf32> to vector<2x128xf32>
    %177 = arith.mulf %176, %173 : vector<2x128xf32>
    %178 = arith.addf %144, %177 : vector<2x128xf32>
    %c0_78 = arith.constant 0 : index
    %c8 = arith.constant 8 : index
    %179 = arith.index_cast %5 : i32 to index
    %c0_79 = arith.constant 0 : index
    %180 = vector.load %arg3[%c0_78, %c8, %179, %c0_79] : memref<1x12x2x128xf32, #tpu.memory_space<vmem>>, vector<1x1x2x128xf32>
    %181 = vector.shape_cast %180 : vector<1x1x2x128xf32> to vector<2x128xf32>
    %c0_80 = arith.constant 0 : index
    %c8_81 = arith.constant 8 : index
    %182 = arith.index_cast %5 : i32 to index
    %c0_82 = arith.constant 0 : index
    %183 = vector.load %arg4[%c0_80, %c8_81, %182, %c0_82] : memref<1x12x2x128xf32, #tpu.memory_space<vmem>>, vector<1x1x2x128xf32>
    %184 = vector.shape_cast %183 : vector<1x1x2x128xf32> to vector<2x128xf32>
    %cst_83 = arith.constant 1.000000e+00 : f32
    %185 = vector.broadcast %cst_83 : f32 to vector<2x128xf32>
    %186 = arith.subf %185, %181 : vector<2x128xf32>
    %187 = arith.mulf %186, %186 : vector<2x128xf32>
    %cst_84 = arith.constant 1.000000e-07 : f32
    %188 = vector.broadcast %cst_84 : f32 to vector<2x128xf32>
    %189 = arith.addf %181, %188 : vector<2x128xf32>
    %190 = math.log %189 : vector<2x128xf32>
    %191 = arith.mulf %184, %190 : vector<2x128xf32>
    %192 = arith.mulf %187, %191 : vector<2x128xf32>
    %cst_85 = arith.constant 0.699999988 : f32
    %193 = vector.broadcast %cst_85 : f32 to vector<2x128xf32>
    %194 = arith.mulf %192, %193 : vector<2x128xf32>
    %195 = arith.mulf %181, %181 : vector<2x128xf32>
    %cst_86 = arith.constant 1.000000e+00 : f32
    %196 = vector.broadcast %cst_86 : f32 to vector<2x128xf32>
    %197 = arith.subf %196, %184 : vector<2x128xf32>
    %cst_87 = arith.constant 1.000000e+00 : f32
    %198 = vector.broadcast %cst_87 : f32 to vector<2x128xf32>
    %199 = arith.subf %198, %181 : vector<2x128xf32>
    %cst_88 = arith.constant 1.000000e-07 : f32
    %200 = vector.broadcast %cst_88 : f32 to vector<2x128xf32>
    %201 = arith.addf %199, %200 : vector<2x128xf32>
    %202 = math.log %201 : vector<2x128xf32>
    %203 = arith.mulf %197, %202 : vector<2x128xf32>
    %204 = arith.mulf %195, %203 : vector<2x128xf32>
    %cst_89 = arith.constant 3.000000e-01 : f32
    %205 = vector.broadcast %cst_89 : f32 to vector<2x128xf32>
    %206 = arith.mulf %204, %205 : vector<2x128xf32>
    %207 = arith.addf %194, %206 : vector<2x128xf32>
    %c0_90 = arith.constant 0 : index
    %c4_91 = arith.constant 4 : index
    %208 = arith.index_cast %5 : i32 to index
    %c0_92 = arith.constant 0 : index
    %209 = vector.load %arg5[%c0_90, %c4_91, %208, %c0_92] : memref<1x5x2x128xf32, #tpu.memory_space<vmem>>, vector<1x1x2x128xf32>
    %210 = vector.shape_cast %209 : vector<1x1x2x128xf32> to vector<2x128xf32>
    %211 = arith.mulf %210, %207 : vector<2x128xf32>
    %212 = arith.addf %178, %211 : vector<2x128xf32>
    %213 = arith.subf %3, %212 : vector<2x128xf32>
    %c0_93 = arith.constant 0 : index
    %c1_94 = arith.constant 1 : index
    %214 = arith.index_cast %5 : i32 to index
    %c0_95 = arith.constant 0 : index
    %215 = vector.load %arg3[%c0_93, %c1_94, %214, %c0_95] : memref<1x12x2x128xf32, #tpu.memory_space<vmem>>, vector<1x1x2x128xf32>
    %216 = vector.shape_cast %215 : vector<1x1x2x128xf32> to vector<2x128xf32>
    %c0_96 = arith.constant 0 : index
    %c1_97 = arith.constant 1 : index
    %217 = arith.index_cast %5 : i32 to index
    %c0_98 = arith.constant 0 : index
    %218 = vector.load %arg4[%c0_96, %c1_97, %217, %c0_98] : memref<1x12x2x128xf32, #tpu.memory_space<vmem>>, vector<1x1x2x128xf32>
    %219 = vector.shape_cast %218 : vector<1x1x2x128xf32> to vector<2x128xf32>
    %220 = arith.subf %216, %219 : vector<2x128xf32>
    %cst_99 = arith.constant 1.000000e+00 : f32
    %221 = vector.broadcast %cst_99 : f32 to vector<2x128xf32>
    %222 = arith.cmpf ole, %220, %221 : vector<2x128xf32>
    %cst_100 = arith.constant 5.000000e-01 : f32
    %223 = vector.broadcast %cst_100 : f32 to vector<2x128xf32>
    %224 = arith.mulf %223, %220 : vector<2x128xf32>
    %225 = arith.mulf %224, %220 : vector<2x128xf32>
    %226 = math.absf %220 : vector<2x128xf32>
    %cst_101 = arith.constant 1.000000e+00 : f32
    %227 = vector.broadcast %cst_101 : f32 to vector<2x128xf32>
    %228 = arith.mulf %227, %226 : vector<2x128xf32>
    %cst_102 = arith.constant 5.000000e-01 : f32
    %229 = vector.broadcast %cst_102 : f32 to vector<2x128xf32>
    %230 = arith.subf %228, %229 : vector<2x128xf32>
    %231 = arith.select %222, %225, %230 : vector<2x128xi1>, vector<2x128xf32>
    %232 = arith.mulf %231, %8 : vector<2x128xf32>
    %233 = arith.addf %3, %232 : vector<2x128xf32>
    %c0_103 = arith.constant 0 : index
    %c2_104 = arith.constant 2 : index
    %234 = arith.index_cast %5 : i32 to index
    %c0_105 = arith.constant 0 : index
    %235 = vector.load %arg3[%c0_103, %c2_104, %234, %c0_105] : memref<1x12x2x128xf32, #tpu.memory_space<vmem>>, vector<1x1x2x128xf32>
    %236 = vector.shape_cast %235 : vector<1x1x2x128xf32> to vector<2x128xf32>
    %c0_106 = arith.constant 0 : index
    %c2_107 = arith.constant 2 : index
    %237 = arith.index_cast %5 : i32 to index
    %c0_108 = arith.constant 0 : index
    %238 = vector.load %arg4[%c0_106, %c2_107, %237, %c0_108] : memref<1x12x2x128xf32, #tpu.memory_space<vmem>>, vector<1x1x2x128xf32>
    %239 = vector.shape_cast %238 : vector<1x1x2x128xf32> to vector<2x128xf32>
    %240 = arith.subf %236, %239 : vector<2x128xf32>
    %cst_109 = arith.constant 1.000000e+00 : f32
    %241 = vector.broadcast %cst_109 : f32 to vector<2x128xf32>
    %242 = arith.cmpf ole, %240, %241 : vector<2x128xf32>
    %cst_110 = arith.constant 5.000000e-01 : f32
    %243 = vector.broadcast %cst_110 : f32 to vector<2x128xf32>
    %244 = arith.mulf %243, %240 : vector<2x128xf32>
    %245 = arith.mulf %244, %240 : vector<2x128xf32>
    %246 = math.absf %240 : vector<2x128xf32>
    %cst_111 = arith.constant 1.000000e+00 : f32
    %247 = vector.broadcast %cst_111 : f32 to vector<2x128xf32>
    %248 = arith.mulf %247, %246 : vector<2x128xf32>
    %cst_112 = arith.constant 5.000000e-01 : f32
    %249 = vector.broadcast %cst_112 : f32 to vector<2x128xf32>
    %250 = arith.subf %248, %249 : vector<2x128xf32>
    %251 = arith.select %242, %245, %250 : vector<2x128xi1>, vector<2x128xf32>
    %252 = arith.mulf %251, %8 : vector<2x128xf32>
    %253 = arith.addf %3, %252 : vector<2x128xf32>
    %c0_113 = arith.constant 0 : index
    %c9 = arith.constant 9 : index
    %254 = arith.index_cast %5 : i32 to index
    %c0_114 = arith.constant 0 : index
    %255 = vector.load %arg3[%c0_113, %c9, %254, %c0_114] : memref<1x12x2x128xf32, #tpu.memory_space<vmem>>, vector<1x1x2x128xf32>
    %256 = vector.shape_cast %255 : vector<1x1x2x128xf32> to vector<2x128xf32>
    %c0_115 = arith.constant 0 : index
    %c9_116 = arith.constant 9 : index
    %257 = arith.index_cast %5 : i32 to index
    %c0_117 = arith.constant 0 : index
    %258 = vector.load %arg4[%c0_115, %c9_116, %257, %c0_117] : memref<1x12x2x128xf32, #tpu.memory_space<vmem>>, vector<1x1x2x128xf32>
    %259 = vector.shape_cast %258 : vector<1x1x2x128xf32> to vector<2x128xf32>
    %260 = arith.subf %256, %259 : vector<2x128xf32>
    %cst_118 = arith.constant 1.000000e+00 : f32
    %261 = vector.broadcast %cst_118 : f32 to vector<2x128xf32>
    %262 = arith.cmpf ole, %260, %261 : vector<2x128xf32>
    %cst_119 = arith.constant 5.000000e-01 : f32
    %263 = vector.broadcast %cst_119 : f32 to vector<2x128xf32>
    %264 = arith.mulf %263, %260 : vector<2x128xf32>
    %265 = arith.mulf %264, %260 : vector<2x128xf32>
    %266 = math.absf %260 : vector<2x128xf32>
    %cst_120 = arith.constant 1.000000e+00 : f32
    %267 = vector.broadcast %cst_120 : f32 to vector<2x128xf32>
    %268 = arith.mulf %267, %266 : vector<2x128xf32>
    %cst_121 = arith.constant 5.000000e-01 : f32
    %269 = vector.broadcast %cst_121 : f32 to vector<2x128xf32>
    %270 = arith.subf %268, %269 : vector<2x128xf32>
    %271 = arith.select %262, %265, %270 : vector<2x128xi1>, vector<2x128xf32>
    %272 = arith.mulf %271, %8 : vector<2x128xf32>
    %273 = arith.addf %3, %272 : vector<2x128xf32>
    %c0_122 = arith.constant 0 : index
    %c10 = arith.constant 10 : index
    %274 = arith.index_cast %5 : i32 to index
    %c0_123 = arith.constant 0 : index
    %275 = vector.load %arg3[%c0_122, %c10, %274, %c0_123] : memref<1x12x2x128xf32, #tpu.memory_space<vmem>>, vector<1x1x2x128xf32>
    %276 = vector.shape_cast %275 : vector<1x1x2x128xf32> to vector<2x128xf32>
    %c0_124 = arith.constant 0 : index
    %c10_125 = arith.constant 10 : index
    %277 = arith.index_cast %5 : i32 to index
    %c0_126 = arith.constant 0 : index
    %278 = vector.load %arg4[%c0_124, %c10_125, %277, %c0_126] : memref<1x12x2x128xf32, #tpu.memory_space<vmem>>, vector<1x1x2x128xf32>
    %279 = vector.shape_cast %278 : vector<1x1x2x128xf32> to vector<2x128xf32>
    %280 = arith.subf %276, %279 : vector<2x128xf32>
    %cst_127 = arith.constant 1.000000e+00 : f32
    %281 = vector.broadcast %cst_127 : f32 to vector<2x128xf32>
    %282 = arith.cmpf ole, %280, %281 : vector<2x128xf32>
    %cst_128 = arith.constant 5.000000e-01 : f32
    %283 = vector.broadcast %cst_128 : f32 to vector<2x128xf32>
    %284 = arith.mulf %283, %280 : vector<2x128xf32>
    %285 = arith.mulf %284, %280 : vector<2x128xf32>
    %286 = math.absf %280 : vector<2x128xf32>
    %cst_129 = arith.constant 1.000000e+00 : f32
    %287 = vector.broadcast %cst_129 : f32 to vector<2x128xf32>
    %288 = arith.mulf %287, %286 : vector<2x128xf32>
    %cst_130 = arith.constant 5.000000e-01 : f32
    %289 = vector.broadcast %cst_130 : f32 to vector<2x128xf32>
    %290 = arith.subf %288, %289 : vector<2x128xf32>
    %291 = arith.select %282, %285, %290 : vector<2x128xi1>, vector<2x128xf32>
    %292 = arith.mulf %291, %8 : vector<2x128xf32>
    %293 = arith.addf %3, %292 : vector<2x128xf32>
    %c0_131 = arith.constant 0 : index
    %c11 = arith.constant 11 : index
    %294 = arith.index_cast %5 : i32 to index
    %c0_132 = arith.constant 0 : index
    %295 = vector.load %arg3[%c0_131, %c11, %294, %c0_132] : memref<1x12x2x128xf32, #tpu.memory_space<vmem>>, vector<1x1x2x128xf32>
    %296 = vector.shape_cast %295 : vector<1x1x2x128xf32> to vector<2x128xf32>
    %c0_133 = arith.constant 0 : index
    %c11_134 = arith.constant 11 : index
    %297 = arith.index_cast %5 : i32 to index
    %c0_135 = arith.constant 0 : index
    %298 = vector.load %arg4[%c0_133, %c11_134, %297, %c0_135] : memref<1x12x2x128xf32, #tpu.memory_space<vmem>>, vector<1x1x2x128xf32>
    %299 = vector.shape_cast %298 : vector<1x1x2x128xf32> to vector<2x128xf32>
    %300 = arith.subf %296, %299 : vector<2x128xf32>
    %cst_136 = arith.constant 1.000000e+00 : f32
    %301 = vector.broadcast %cst_136 : f32 to vector<2x128xf32>
    %302 = arith.cmpf ole, %300, %301 : vector<2x128xf32>
    %cst_137 = arith.constant 5.000000e-01 : f32
    %303 = vector.broadcast %cst_137 : f32 to vector<2x128xf32>
    %304 = arith.mulf %303, %300 : vector<2x128xf32>
    %305 = arith.mulf %304, %300 : vector<2x128xf32>
    %306 = math.absf %300 : vector<2x128xf32>
    %cst_138 = arith.constant 1.000000e+00 : f32
    %307 = vector.broadcast %cst_138 : f32 to vector<2x128xf32>
    %308 = arith.mulf %307, %306 : vector<2x128xf32>
    %cst_139 = arith.constant 5.000000e-01 : f32
    %309 = vector.broadcast %cst_139 : f32 to vector<2x128xf32>
    %310 = arith.subf %308, %309 : vector<2x128xf32>
    %311 = arith.select %302, %305, %310 : vector<2x128xi1>, vector<2x128xf32>
    %312 = arith.mulf %311, %8 : vector<2x128xf32>
    %313 = arith.addf %3, %312 : vector<2x128xf32>
    %c1_i32 = arith.constant 1 : i32
    %314 = vector.shape_cast %24 : vector<2x128xf32> to vector<1x2x128xf32>
    %cst_140 = arith.constant dense<0.000000e+00> : vector<1xf32>
    %315 = vector.multi_reduction <add>, %314, %cst_140 [1, 2] : vector<1x2x128xf32> to vector<1xf32>
    %316 = vector.shape_cast %315 : vector<1xf32> to vector<1x1x1xf32>
    %317 = vector.extract %316[0, 0, 0] : f32 from vector<1x1x1xf32>
    %318 = vector.shape_cast %43 : vector<2x128xf32> to vector<1x2x128xf32>
    %cst_141 = arith.constant dense<0.000000e+00> : vector<1xf32>
    %319 = vector.multi_reduction <add>, %318, %cst_141 [1, 2] : vector<1x2x128xf32> to vector<1xf32>
    %320 = vector.shape_cast %319 : vector<1xf32> to vector<1x1x1xf32>
    %321 = vector.extract %320[0, 0, 0] : f32 from vector<1x1x1xf32>
    %322 = vector.shape_cast %213 : vector<2x128xf32> to vector<1x2x128xf32>
    %cst_142 = arith.constant dense<0.000000e+00> : vector<1xf32>
    %323 = vector.multi_reduction <add>, %322, %cst_142 [1, 2] : vector<1x2x128xf32> to vector<1xf32>
    %324 = vector.shape_cast %323 : vector<1xf32> to vector<1x1x1xf32>
    %325 = vector.extract %324[0, 0, 0] : f32 from vector<1x1x1xf32>
    %326 = vector.shape_cast %233 : vector<2x128xf32> to vector<1x2x128xf32>
    %cst_143 = arith.constant dense<0.000000e+00> : vector<1xf32>
    %327 = vector.multi_reduction <add>, %326, %cst_143 [1, 2] : vector<1x2x128xf32> to vector<1xf32>
    %328 = vector.shape_cast %327 : vector<1xf32> to vector<1x1x1xf32>
    %329 = vector.extract %328[0, 0, 0] : f32 from vector<1x1x1xf32>
    %330 = vector.shape_cast %253 : vector<2x128xf32> to vector<1x2x128xf32>
    %cst_144 = arith.constant dense<0.000000e+00> : vector<1xf32>
    %331 = vector.multi_reduction <add>, %330, %cst_144 [1, 2] : vector<1x2x128xf32> to vector<1xf32>
    %332 = vector.shape_cast %331 : vector<1xf32> to vector<1x1x1xf32>
    %333 = vector.extract %332[0, 0, 0] : f32 from vector<1x1x1xf32>
    %334 = vector.shape_cast %273 : vector<2x128xf32> to vector<1x2x128xf32>
    %cst_145 = arith.constant dense<0.000000e+00> : vector<1xf32>
    %335 = vector.multi_reduction <add>, %334, %cst_145 [1, 2] : vector<1x2x128xf32> to vector<1xf32>
    %336 = vector.shape_cast %335 : vector<1xf32> to vector<1x1x1xf32>
    %337 = vector.extract %336[0, 0, 0] : f32 from vector<1x1x1xf32>
    %338 = vector.shape_cast %293 : vector<2x128xf32> to vector<1x2x128xf32>
    %cst_146 = arith.constant dense<0.000000e+00> : vector<1xf32>
    %339 = vector.multi_reduction <add>, %338, %cst_146 [1, 2] : vector<1x2x128xf32> to vector<1xf32>
    %340 = vector.shape_cast %339 : vector<1xf32> to vector<1x1x1xf32>
    %341 = vector.extract %340[0, 0, 0] : f32 from vector<1x1x1xf32>
    %342 = vector.shape_cast %313 : vector<2x128xf32> to vector<1x2x128xf32>
    %cst_147 = arith.constant dense<0.000000e+00> : vector<1xf32>
    %343 = vector.multi_reduction <add>, %342, %cst_147 [1, 2] : vector<1x2x128xf32> to vector<1xf32>
    %344 = vector.shape_cast %343 : vector<1xf32> to vector<1x1x1xf32>
    %345 = vector.extract %344[0, 0, 0] : f32 from vector<1x1x1xf32>
    %346 = vector.broadcast %317 : f32 to vector<1xf32>
    %347 = vector.broadcast %321 : f32 to vector<1xf32>
    %348 = vector.broadcast %325 : f32 to vector<1xf32>
    %349 = vector.broadcast %329 : f32 to vector<1xf32>
    %350 = vector.broadcast %333 : f32 to vector<1xf32>
    %351 = vector.broadcast %337 : f32 to vector<1xf32>
    %352 = vector.broadcast %341 : f32 to vector<1xf32>
    %353 = vector.broadcast %345 : f32 to vector<1xf32>
    %354 = tpu.concatenate %346, %347, %348, %349, %350, %351, %352, %353 in 0 : vector<1xf32>, vector<1xf32>, vector<1xf32>, vector<1xf32>, vector<1xf32>, vector<1xf32>, vector<1xf32>, vector<1xf32> -> vector<8xf32>
    %c0_148 = arith.constant 0 : index
    %c0_149 = arith.constant 0 : index
    %c0_150 = arith.constant 0 : index
    %355 = vector.load %arg6[%c0_148, %c0_149, %c0_150] : memref<1x1x8xf32, #tpu.memory_space<vmem>>, vector<1x1x8xf32>
    %356 = vector.shape_cast %355 : vector<1x1x8xf32> to vector<8xf32>
    %357 = arith.addf %356, %354 : vector<8xf32>
    %c0_151 = arith.constant 0 : index
    %c0_152 = arith.constant 0 : index
    %c0_153 = arith.constant 0 : index
    %358 = vector.load %arg6[%c0_151, %c0_152, %c0_153] : memref<1x1x8xf32, #tpu.memory_space<vmem>>, vector<1x1x8xf32>
    %359 = vector.shape_cast %358 : vector<1x1x8xf32> to vector<8xf32>
    %360 = vector.shape_cast %357 : vector<8xf32> to vector<1x1x8xf32>
    tpu.vector_store %arg6[%c0_151, %c0_152, %c0_153], %360 {strides = array<i32>} : memref<1x1x8xf32, #tpu.memory_space<vmem>>, vector<1x1x8xf32>,
    return
  }
  func.func @transform_0(%arg0: i32, %arg1: i32, %arg2: i32) -> (i32, i32, i32, i32) {
    %c1_i32 = arith.constant 1 : i32
    %0 = arith.muli %arg0, %c1_i32 : i32
    %1 = arith.addi %0, %arg2 : i32
    %c0_i32 = arith.constant 0 : i32
    %2 = arith.minsi %1, %c0_i32 : i32
    %c0_i32_0 = arith.constant 0 : i32
    %c0_i32_1 = arith.constant 0 : i32
    %c0_i32_2 = arith.constant 0 : i32
    return %arg1, %c0_i32_0, %2, %c0_i32_1 : i32, i32, i32, i32
  }
  func.func @transform_1(%arg0: i32, %arg1: i32, %arg2: i32) -> (i32, i32, i32, i32) {
    %c1_i32 = arith.constant 1 : i32
    %0 = arith.muli %arg0, %c1_i32 : i32
    %1 = arith.addi %0, %arg2 : i32
    %c0_i32 = arith.constant 0 : i32
    %2 = arith.minsi %1, %c0_i32 : i32
    %c0_i32_0 = arith.constant 0 : i32
    %c0_i32_1 = arith.constant 0 : i32
    %c0_i32_2 = arith.constant 0 : i32
    return %arg1, %c0_i32_0, %2, %c0_i32_1 : i32, i32, i32, i32
  }
  func.func @transform_2(%arg0: i32, %arg1: i32, %arg2: i32) -> (i32, i32, i32, i32) {
    %c1_i32 = arith.constant 1 : i32
    %0 = arith.muli %arg0, %c1_i32 : i32
    %1 = arith.addi %0, %arg2 : i32
    %c0_i32 = arith.constant 0 : i32
    %2 = arith.minsi %1, %c0_i32 : i32
    %c0_i32_0 = arith.constant 0 : i32
    %c0_i32_1 = arith.constant 0 : i32
    %c0_i32_2 = arith.constant 0 : i32
    return %arg1, %c0_i32_0, %2, %c0_i32_1 : i32, i32, i32, i32
  }
  func.func @transform_3(%arg0: i32, %arg1: i32, %arg2: i32) -> (i32, i32, i32) {
    %c2_i32 = arith.constant 2 : i32
    %0 = arith.muli %arg0, %c2_i32 : i32
    %1 = arith.addi %0, %arg1 : i32
    %c0_i32 = arith.constant 0 : i32
    %c0_i32_0 = arith.constant 0 : i32
    %c0_i32_1 = arith.constant 0 : i32
    return %1, %c0_i32, %c0_i32_0 : i32, i32, i32
  }
}

</mosaic_0001>

<bundles_post_ra>
// kernel: tpu_custom_call.1
= control target key start
LH: loop header
LB: loop body
LE: loop exit
PB: predicated region body
PF: predicated region fallthrough
CT: control target
= control target key end

     0   :  { %s1502_s0 = inlined_call_operand.hbm [shape: f32[2,12,2,128], index: 0, kind: input, shape index: {}]   ;;  %s1503_s1 = inlined_call_operand.hbm [shape: f32[2,12,2,128], index: 1, kind: input, shape index: {}]   ;;  %s1504_s2 = inlined_call_operand.hbm [shape: f32[2,5,2,128], index: 2, kind: input, shape index: {}]   ;;  %s1505_s3 = inlined_call_operand.hbm [shape: f32[2,1,8], index: 3, kind: output, shape index: {}]  }
   0x1   :  { %1510 = sst [smem:[#allocation15_spill]] %s1503_s1 }
   0x2   :  { %8 = vsyncpa [#allocation3], 0 }
   0x3   :  { %10 = vsyncpa [#allocation3 + $0x1], 0 }
   0x4   :  { %11 = vsyncpa [#allocation6], 0 }
   0x5   :  { %13 = vsyncpa [#allocation6 + $0x1], 0 }
   0x6   :  { %14 = vsyncpa [#allocation4], 0 }
   0x7   :  { %16 = vsyncpa [#allocation4 + $0x1], 0  ;;  %s1208_s12 = smov 0   ;;  %s1210_s13 = smov 0  }
   0x8   :  { %s1212_s14 = smov 0   ;;  %s1214_s15 = smov 0  }
   0x9   :  { %s1216_s16 = smov 0   ;;  %s1218_s17 = smov 0  }
   0xa LB: > { %1511 = sst [smem:[#allocation12_spill]] %s1167_s14  ;;  %s1239_s18 = sadd.s32 4294967295, %s1179_s17   ;;  %s1179_s17 = sphi %s1218_s17, %s22_s17   ;;  %s1175_s16 = sphi %s1216_s16, %s1529_s16   ;;  %s1171_s15 = sphi %s1214_s15, %s1528_s15   ;;  %s1167_s14 = sphi %s1212_s14, %s1524_s14   ;;  %s1163_s13 = sphi %s1210_s13, %s1527_s13   ;;  %s1159_s12 = sphi %s1208_s12, %s1526_s12  }
   0xb   : > { %s849_s19 = sadd.s32 4294967294, %s1179_s17   ;;  %s37_s20 = sadd.s32 1, %s1175_s16 }
   0xc   : > { %s56_s21 = sadd.s32 1, %s1167_s14  ;;  %p39_p0 = scmp.ge.s32.totalorder %s37_s20, 2 }
   0xd   : > { %p63_p1 = scmp.ne.s32.totalorder %s1167_s14, %s1163_s13  ;;  %p64_p2 = scmp.eq.s32.totalorder %s1179_s17, 0 }
   0xe   : > { %p69_p3 = scmp.ne.s32.totalorder %s1163_s13, %s1159_s12  ;;  %s1531_s20 = smov (%p39_p0, %s37_s20), 0 }
   0xf   : > { %1512 = sst [smem:[#allocation13_spill]] %s1531_s20  ;;  %p1251_p4 = por %p64_p2, %p63_p1 }
  0x10   : > { %p70_p5 = scmp.eq.s32.totalorder %s1239_s18, 0  ;;  %s51_s23 = ssub.s32 %s1175_s16, %s1531_s20 }
  0x11   : > { %p165_p6 = scmp.eq.s32.totalorder %s1239_s18, 1  ;;  %p54_p7 = scmp.eq.s32.totalorder %s51_s23, 0 }
  0x12   : > { %p1259_p8 = por %p70_p5, %p69_p3  ;;  %p171_p10 = scmp.eq.s32.totalorder %s849_s19, 1 }
  0x13   : > { %p1263_p9 = por %p165_p6, %p63_p1  ;;  %p938_p13 = scmp.lt.s32.totalorder %s1179_s17, 2 }
  0x14   : > { %s1268_s26 = scalar_select %p54_p7, %s1167_s14, %s56_s21  }
  0x15   : > { %p1270_p11 = por %p171_p10, %p69_p3  ;;  %s1277_s28 = sand.u32 1, %s1167_s14  }
  0x16   : > { %1516 = sst [smem:[#allocation14_spill]] %s1268_s26  ;;  %s892_s29 = smul.u32 24, %s1277_s28 }
  0x17   : > { %s893_s30 = smul.u32 384, %s1175_s16  ;;  %p1283_p0 = pnand %p938_p13, %p1251_p4 }
  0x18   : > { %s216_s5 = sand.u32 1, %s1179_s17   ;;  %s1519_s1 = sld [smem:[#allocation15_spill]] }
  0x19   : > { %s220_s9 = scalar_lea.vmem [#allocation5], %s892_s29  ;;  %p855_p1 = scmp.ge.s32.totalorder %s1179_s17, 1 }
  0x1a   : > { %s231_s10 = sshll.u32 %s220_s9, 4  ;;  %p264_p2 = scmp.lt.s32.totalorder %s1179_s17, 3  ;;  %s232_s10 = int_to_ptr.vmem [resolvable:$true] %s231_s10 }
  0x1b   : > { %s1297_s11 = scalar_lea.sflag [#allocation6], %s216_s5  ;;  %p1013_p3 = pneg %p1283_p0 }
  0x1c   : > { %s1024_s19 = scalar_lea.vmem %s232_s10, 384  ;;  %s1181_s21 = smov [#allocation5]  }
  0x1d   : > { %p1025_p4 = scmp.ne.s32.totalorder %s232_s10, %s1024_s19  ;;  %s1029_s22 = sshll.u32 %s1181_s21, 4  ;;  %s1030_s22 = int_to_ptr.vmem [resolvable:$false] %s1029_s22 }
  0x1e   : > { %s230_s8 = scalar_lea.hbm %s1519_s1, %s893_s30  ;;  %s1031_s23 = scalar_lea.vmem %s1030_s22, 768 }
  0x1f   : > { %p1027_p5 = pnand %p1025_p4, %p1013_p3  ;;  %p1032_p7 = scmp.lt.s32.totalorder %s232_s10, %s1030_s22 }
  0x20   : > { %p1033_p10 = scmp.lt.s32.totalorder %s1031_s23, %s1024_s19 }
  0x21   : > { %p1028_p6 = pneg %p1027_p5 }
  0x22   : > { %p1034_p13 = por %p1033_p10, %p1032_p7 }
  0x24   : > { %p1035_p12 = pnand %p1034_p13, %p1028_p6 }
  0x26   : > { %1038 = shalt.err (!%p1035_p12)
}
  0x27   : > { %s1508_s6 = smov 32   ;;  %s1183_s5 = smov 2  }
  0x28   : > { %930 = dma.hbm_to_vmem [thread:$0]  (!%p1283_p0), %s230_s8, 384, %s232_s10, %s1297_s11, %s1508_s6, %s1508_s6, %s1183_s5  }
  0x29   : > { %p1314_p12 = pnand %p855_p1, %p264_p2  ;;  %s205_s21 = scalar_lea.hbm %s1502_s0, %s893_s30 }
  0x2a   : > { %s195_s22 = scalar_lea.vmem [#allocation2], %s892_s29  ;;  %s896_s1 = smul.u32 10, %s1277_s28 }
  0x2b   : > { %s206_s23 = sshll.u32 %s195_s22, 4  ;;  %s897_s20 = smul.u32 160, %s1175_s16  ;;  %s207_s23 = int_to_ptr.vmem [resolvable:$true] %s206_s23 }
  0x2c   : > { %s192_s26 = scalar_lea.sflag [#allocation3], %s1277_s28  ;;  %s1052_s14 = scalar_lea.vmem %s207_s23, 384 }
  0x2d   : > { %p1053_p4 = scmp.ne.s32.totalorder %s207_s23, %s1052_s14  ;;  %s1184_s8 = smov [#allocation2]  }
  0x2e   : > { %s1057_s10 = sshll.u32 %s1184_s8, 4  ;;  %s1058_s10 = int_to_ptr.vmem [resolvable:$false] %s1057_s10 }
  0x2f   : > { %p1055_p1 = pnand %p1053_p4, %p1013_p3  ;;  %s1059_s6 = scalar_lea.vmem %s1058_s10, 768 }
  0x30   : > { %p1060_p5 = scmp.lt.s32.totalorder %s207_s23, %s1058_s10  ;;  %p1061_p6 = scmp.lt.s32.totalorder %s1059_s6, %s1052_s14 }
  0x31   : > { %p1056_p2 = pneg %p1055_p1 }
  0x32   : > { %p1062_p7 = por %p1061_p6, %p1060_p5 }
  0x34   : > { %p1063_p10 = pnand %p1062_p7, %p1056_p2 }
  0x36   : > { %1066 = shalt.err (!%p1063_p10)
}
  0x37   : > { %s1521_s29 = smov 32   ;;  %s255_s9 = scalar_lea.hbm %s1504_s2, %s897_s20 }
  0x38   : > { %927 = dma.hbm_to_vmem [thread:$0]  (!%p1283_p0), %s205_s21, 384, %s207_s23, %s192_s26, %s1521_s29, %s1521_s29, %s1183_s5  }
  0x39   : > { %s245_s19 = scalar_lea.vmem [#allocation7], %s896_s1  ;;  %s1185_s14 = smov [#allocation7]  }
  0x3a   : > { %s256_s22 = sshll.u32 %s245_s19, 4  ;;  %s1085_s6 = sshll.u32 %s1185_s14, 4  ;;  %s257_s22 = int_to_ptr.vmem [resolvable:$true] %s256_s22  ;;  %s1086_s6 = int_to_ptr.vmem [resolvable:$false] %s1085_s6 }
  0x3b   : > { %s1080_s8 = scalar_lea.vmem %s257_s22, 160  ;;  %s1087_s10 = scalar_lea.vmem %s1086_s6, 320 }
  0x3c   : > { %p1081_p13 = scmp.ne.s32.totalorder %s257_s22, %s1080_s8  ;;  %p1088_p2 = scmp.lt.s32.totalorder %s257_s22, %s1086_s6 }
  0x3d   : > { %p1089_p5 = scmp.lt.s32.totalorder %s1087_s10, %s1080_s8 }
  0x3e   : > { %p1083_p4 = pnand %p1081_p13, %p1013_p3 }
  0x3f   : > { %p1090_p6 = por %p1089_p5, %p1088_p2 }
  0x40   : > { %p1084_p1 = pneg %p1083_p4 }
  0x42   : > { %p1091_p7 = pnand %p1090_p6, %p1084_p1 }
  0x44   : > { %1094 = shalt.err (!%p1091_p7)
}
  0x45   : > { %933 = dma.hbm_to_vmem [thread:$0]  (!%p1283_p0), %s255_s9, 160, %s257_s22, %s1297_s11, %s1521_s29, %s1521_s29, %s1183_s5  }
  0x46   : > { %268 = sbr.rel (%p1314_p12) target bundleno = 356 (0x164), region = 32  ;;  %s1351_s1 = sand.u32 (!%p1314_p12), 1, %s1163_s13  }
  0x47   : > { %s898_s20 = smul.u32 (!%p1314_p12), 24, %s1351_s1  ;;  %s271_s26 = scalar_lea.sflag (!%p1314_p12), [#allocation3], %s1351_s1 }
  0x49   : > { %s1355_s21 = scalar_lea.vmem (!%p1314_p12), [#allocation2], %s898_s20 }
  0x4b   : > { %1146 = dma.done.wait (%p1259_p8), %s271_s26, 384  }
  0x4c   : > { %1148 = vsyncadd (%p1259_p8), %s271_s26, 4294966912  ;;  %s279_s4 = sand.u32 1, %s1239_s18   ;;  %s1362_s5 = scalar_lea.vmem [#allocation5], %s898_s20 }
  0x4d   : > { %s280_s11 = scalar_lea.sflag [#allocation6], %s279_s4 }
  0x4e   : > { %1150 = dma.done.wait (%p1259_p8), %s280_s11, 544  }
  0x4f   : > { %1152 = vsyncadd (%p1259_p8), %s280_s11, 4294966752  ;;  %v1369_v0 = vld [vmem:[%s1362_s5] sm:$0x3]  ;;  %v342_v1 = vld [vmem:[%s1355_s21] sm:$0x3]  ;;  %vm563_vm0 = vcmask 1041408  }
  0x50   : > { %v857_v2 = vld [vmem:[%s1355_s21 + $0x6] sm:$0x3]  ;;  %v343_v3 = vsub.f32 %v342_v1, %v1369_v0  ;;  %v858_v4 = vld [vmem:[%s1362_s5 + $0x6] sm:$0x3]  ;;  %v874_v5 = vld [vmem:[%s1355_s21 + $0x2] sm:$0x3] }
  0x51   : > { %v875_v6 = vld [vmem:[%s1362_s5 + $0x2] sm:$0x3]  ;;  %v356_v7 = vsub.f32 %v857_v2, %v858_v4  ;;  %v877_v9 = vld [vmem:[%s1355_s21 + $0x4] sm:$0x3]  ;;  %v878_v10 = vld [vmem:[%s1362_s5 + $0x4] sm:$0x3] }
  0x52   : > { %v499_v8 = vsub.f32 %v874_v5, %v875_v6  ;;  %vm344_vm1 = vcmp.le.f32.partialorder %v343_v3, 1.0  ;;  %v345_v11 = vmul.f32 0.5, %v343_v3  ;;  %v347_v12 = vand.u32 2147483647, %v343_v3  ;;  %v1380_v20 = vld [vmem:[%s1355_s21 + $0x8] sm:$0x3] }
  0x53   : > { %v512_v13 = vsub.f32 %v877_v9, %v878_v10  ;;  %vm357_vm2 = vcmp.le.f32.partialorder %v356_v7, 1.0  ;;  %v358_v14 = vmul.f32 0.5, %v356_v7  ;;  %v360_v15 = vand.u32 2147483647, %v356_v7  ;;  %v862_v32 = vld [vmem:[%s1355_s21 + $0xa] sm:$0x3] }
  0x54   : > { %vm500_vm3 = vcmp.le.f32.partialorder %v499_v8, 1.0  ;;  %v346_v16 = vmul.f32 %v345_v11, %v343_v3  ;;  %v856_v17 = vadd.f32 -0.5, %v347_v12  ;;  %v501_v18 = vmul.f32 0.5, %v499_v8  ;;  %v865_v41 = vld [vmem:[%s1355_s21 + $0xc] sm:$0x3]  ;;  %s899_s18 = smul.u32 10, %s1351_s1 }
  0x55   : > { %v503_v19 = vand.u32 2147483647, %v499_v8  ;;  %v359_v21 = vmul.f32 %v358_v14, %v356_v7  ;;  %v859_v22 = vadd.f32 -0.5, %v360_v15  ;;  %vm513_vm4 = vcmp.le.f32.partialorder %v512_v13, 1.0  ;;  %v1396_v45 = vld [vmem:[%s1355_s21 + $0xe] sm:$0x3] }
  0x56   : > { %v514_v23 = vmul.f32 0.5, %v512_v13  ;;  %v349_v24 = vsel %vm344_vm1, %v346_v16, %v856_v17  ;;  %v502_v25 = vmul.f32 %v501_v18, %v499_v8  ;;  %v516_v27 = vand.u32 2147483647, %v512_v13  ;;  %v871_v51 = vld [vmem:[%s1355_s21 + $0x10] sm:$0x3]  ;;  %s1435_s24 = scalar_lea.vmem [#allocation7], %s899_s18 }
  0x57   : > { %v876_v26 = vadd.f32 -0.5, %v503_v19  ;;  %v564_v28 = vsel %vm563_vm0, %v349_v24, 0.0  ;;  %v362_v29 = vsel %vm357_vm2, %v359_v21, %v859_v22  ;;  %v369_v31 = vsub.f32 1.0, %v1380_v20  ;;  %v883_v52 = vld [vmem:[%s1355_s21 + $0x14] sm:$0x3]  ;;  %s1454_s7 = scalar_lea.vmem [#allocation8], %s1351_s1 }
  0x58   : > { %v515_v30 = vmul.f32 %v514_v23, %v512_v13  ;;  %565 = vadd.xlane.f32.xlu0 %v564_v28  ;;  %v879_v34 = vadd.f32 -0.5, %v516_v27  ;;  %v371_v35 = vadd.f32 1e-07, %v1380_v20  ;;  %v574_v36 = vsel %vm563_vm0, %v362_v29, 0.0  ;;  %v884_v55 = vld [vmem:[%s1362_s5 + $0x14] sm:$0x3] }
  0x59   : > { %v505_v33 = vsel %vm500_vm3, %v502_v25, %v876_v26  ;;  %v379_v39 = vadd.f32 1e-07, %v369_v31  ;;  %v393_v40 = vsub.f32 1.0, %v862_v32  ;;  %v395_v44 = vadd.f32 1e-07, %v862_v32  ;;  %s889_s8 = sshll.u32 %s1171_s15, 4 }
  0x5a   : > { %v506_v37 = vmul.f32 %v505_v33, %v1369_v0  ;;  %v518_v38 = vsel %vm513_vm4, %v515_v30, %v879_v34  ;;  %991 = vlog2.f32 %v371_v35  ;;  %v420_v48 = vsub.f32 1.0, %v865_v41  ;;  %v861_v63 = vld [vmem:[%s1362_s5 + $0x8] sm:$0x3]  ;;  %v863_v1 = vld [vmem:[%s1362_s5 + $0xa] sm:$0x3]  ;;  %s694_s6 = sshll.u32 %s1454_s7, 4  ;;  %s692_s26 = scalar_lea.hbm %s1505_s3, %s889_s8  ;;  %s695_s6 = int_to_ptr.vmem [resolvable:$true] %s694_s6 }
  0x5b   : > { %v519_v43 = vmul.f32 %v518_v38, %v1369_v0  ;;  %993 = vlog2.f32 %v379_v39  ;;  %v403_v46 = vadd.f32 1e-07, %v393_v40  ;;  %v422_v49 = vadd.f32 1e-07, %v865_v41  ;;  %v866_v7 = vld [vmem:[%s1362_s5 + $0xc] sm:$0x3] }
  0x5c   : > { %v594_v42 = vsel %vm563_vm0, %v506_v37, 0.0  ;;  %575 = vadd.xlane.f32.xlu0 %v574_v36  ;;  %995 = vlog2.f32 %v395_v44  ;;  %v447_v50 = vsub.f32 1.0, %v1396_v45  ;;  %v430_v53 = vadd.f32 1e-07, %v420_v48  ;;  %v1413_v11 = vld [vmem:[%s1362_s5 + $0xe] sm:$0x3] }
  0x5d   : > { %595 = vadd.xlane.f32.xlu1 %v594_v42  ;;  %v604_v47 = vsel %vm563_vm0, %v519_v43, 0.0  ;;  %997 = vlog2.f32 %v403_v46  ;;  %v449_v54 = vadd.f32 1e-07, %v1396_v45  ;;  %v1404_v57 = vsub.f32 1.0, %v871_v51  ;;  %v1416_v17 = vld [vmem:[%s1362_s5 + $0x10] sm:$0x3] }
  0x5e   : > { %999 = vlog2.f32 %v422_v49  ;;  %v457_v56 = vadd.f32 1e-07, %v447_v50  ;;  %v475_v58 = vadd.f32 1e-07, %v871_v51  ;;  %v540_v59 = vsub.f32 %v883_v52, %v884_v55  ;;  %v880_v24 = vld [vmem:[%s1355_s21 + $0x12] sm:$0x3] }
  0x5f   : > { %1001 = vlog2.f32 %v430_v53  ;;  %v483_v60 = vadd.f32 1e-07, %v1404_v57  ;;  %v370_v5 = vmul.f32 %v369_v31, %v369_v31  ;;  %v377_v6 = vmul.f32 %v1380_v20, %v1380_v20  ;;  %v881_v30 = vld [vmem:[%s1362_s5 + $0x12] sm:$0x3]  ;;  %s1095_s4 = scalar_lea.vmem %s695_s6, 16  ;;  %s1187_s15 = smov [#allocation8]  }
  0x60   : > { %605 = vadd.xlane.f32.xlu0 %v604_v47  ;;  %1003 = vlog2.f32 %v449_v54  ;;  %v542_v61 = vmul.f32 0.5, %v540_v59  ;;  %v544_v62 = vand.u32 2147483647, %v540_v59  ;;  %vm541_vm5 = vcmp.le.f32.partialorder %v540_v59, 1.0  ;;  %p1096_p8 = scmp.ne.s32.totalorder %s695_s6, %s1095_s4  ;;  %s1099_s11 = sshll.u32 %s1187_s15, 4  ;;  %s1100_s11 = int_to_ptr.vmem [resolvable:$false] %s1099_s11 }
  0x61   : > { %1005 = vlog2.f32 %v457_v56  ;;  %v378_v9 = vsub.f32 1.0, %v861_v63  ;;  %v401_v10 = vmul.f32 %v862_v32, %v862_v32  ;;  %v394_v14 = vmul.f32 %v393_v40, %v393_v40  ;;  %v886_v40 = vld [vmem:[%s1355_s21 + $0x16] sm:$0x3]  ;;  %s680_s21 = scalar_lea.sflag [#allocation4], %s1351_s1  ;;  %p1102_p12 = scmp.lt.s32.totalorder %s695_s6, %s1100_s11 }
  0x62   : > { %1007 = vlog2.f32 %v475_v58  ;;  %v543_v2 = vmul.f32 %v542_v61, %v540_v59  ;;  %v885_v3 = vadd.f32 -0.5, %v544_v62  ;;  %v402_v15 = vsub.f32 1.0, %v863_v1  ;;  %v386_v59 = vld [vmem:[%s1435_s24] sm:$0x3]  ;;  %p1097_p0 = pnand %p1096_p8, %p1263_p9 }
  0x63   : > { %1009 = vlog2.f32 %v483_v60  ;;  %v428_v16 = vmul.f32 %v865_v41, %v865_v41  ;;  %v421_v22 = vmul.f32 %v420_v48, %v420_v48  ;;  %v429_v23 = vsub.f32 1.0, %v866_v7  ;;  %v887_v41 = vld [vmem:[%s1362_s5 + $0x16] sm:$0x3]  ;;  %s1101_s5 = scalar_lea.vmem %s1100_s11, 32 }
  0x64   : > { %v546_v12 = vsel %vm541_vm5, %v543_v2, %v885_v3  ;;  %v448_v27 = vmul.f32 %v447_v50, %v447_v50  ;;  %v456_v28 = vsub.f32 1.0, %v1413_v11  ;;  %v482_v35 = vsub.f32 1.0, %v1416_v17  ;;  %p1098_p3 = pneg %p1097_p0  ;;  %p1103_p10 = scmp.lt.s32.totalorder %s1101_s5, %s1095_s4 }
  0x65   : > { %v547_v18 = vmul.f32 %v546_v12, %v1369_v0  ;;  %v455_v38 = vmul.f32 %v1396_v45, %v1396_v45  ;;  %v481_v39 = vmul.f32 %v871_v51, %v871_v51  ;;  %v1429_v47 = vsub.f32 %v880_v24, %v881_v30 }
  0x66   : > { %v474_v53 = vmul.f32 %v1404_v57, %v1404_v57  ;;  %v554_v56 = vsub.f32 %v886_v40, %v887_v41  ;;  %vm339_vm8 = vcmask 57344   ;;  %p1104_p13 = por %p1103_p10, %p1102_p12 }
  0x67   : > { %v992_v4 = vpop.eup %991  ;;  %v624_v29 = vsel %vm563_vm0, %v547_v18, 0.0  ;;  %vm527_vm6 = vcmp.le.f32.partialorder %v1429_v47, 1.0 }
  0x68   : > { %v373_v8 = vmul.f32 0.6931472, %v992_v4  ;;  %v994_v13 = vpop.eup %993  ;;  %625 = vadd.xlane.f32.xlu0 %v624_v29  ;;  %v870_v29 = vld [vmem:[%s1435_s24 + $0x6] sm:$0x3]  ;;  %vm555_vm7 = vcmp.le.f32.partialorder %v554_v56, 1.0  ;;  %p1105_p4 = pnand %p1104_p13, %p1098_p3 }
  0x69   : > { %v996_v19 = vpop.eup %995  ;;  %v381_v21 = vmul.f32 0.6931472, %v994_v13 }
  0x6a   : > { %v374_v20 = vmul.f32 %v861_v63, %v373_v8  ;;  %v998_v25 = vpop.eup %997  ;;  %v397_v26 = vmul.f32 0.6931472, %v996_v19 }
  0x6b   : > { %v1000_v31 = vpop.eup %999  ;;  %v382_v33 = vmul.f32 %v381_v21, %v378_v9  ;;  %v405_v34 = vmul.f32 0.6931472, %v998_v25  ;;  %v867_v21 = vld [vmem:[%s1435_s24 + $0x4] sm:$0x3] }
  0x6c   : > { %v375_v32 = vmul.f32 %v374_v20, %v370_v5  ;;  %v398_v36 = vmul.f32 %v863_v1, %v397_v26  ;;  %v424_v37 = vmul.f32 0.6931472, %v1000_v31  ;;  %v1002_v42 = vpop.eup %1001  ;;  %v864_v5 = vld [vmem:[%s1435_s24 + $0x2] sm:$0x3]  ;;  %v528_v20 = vmul.f32 0.5, %v1429_v47 }
  0x6d   : > { %v383_v44 = vmul.f32 %v382_v33, %v377_v6  ;;  %v406_v46 = vmul.f32 %v405_v34, %v402_v15  ;;  %v1004_v48 = vpop.eup %1003  ;;  %v432_v52 = vmul.f32 0.6931472, %v1002_v42 }
  0x6e   : > { %v376_v43 = vmul.f32 0.7, %v375_v32  ;;  %v399_v49 = vmul.f32 %v398_v36, %v394_v14  ;;  %v425_v50 = vmul.f32 %v866_v7, %v424_v37  ;;  %v1006_v54 = vpop.eup %1005  ;;  %v451_v51 = vmul.f32 0.6931472, %v1004_v48  ;;  %v873_v32 = vld [vmem:[%s1435_s24 + $0x8] sm:$0x3] }
  0x6f   : > { %v384_v55 = vmul.f32 0.3, %v383_v44  ;;  %v407_v45 = vmul.f32 %v406_v46, %v401_v10  ;;  %v1008_v58 = vpop.eup %1007  ;;  %v433_v62 = vmul.f32 %v432_v52, %v429_v23  ;;  %v459_v63 = vmul.f32 0.6931472, %v1006_v54 }
  0x70   : > { %v400_v60 = vmul.f32 0.7, %v399_v49  ;;  %v426_v61 = vmul.f32 %v425_v50, %v421_v22  ;;  %v1010_v1 = vpop.eup %1009  ;;  %v452_v57 = vmul.f32 %v1413_v11, %v451_v51  ;;  %v477_v4 = vmul.f32 0.6931472, %v1008_v58 }
  0x71   : > { %v385_v2 = vadd.f32 %v384_v55, %v376_v43  ;;  %v408_v3 = vmul.f32 0.3, %v407_v45  ;;  %v434_v7 = vmul.f32 %v433_v62, %v428_v16  ;;  %v460_v8 = vmul.f32 %v459_v63, %v456_v28 }
  0x72   : > { %v427_v6 = vmul.f32 0.7, %v426_v61  ;;  %v485_v9 = vmul.f32 0.6931472, %v1010_v1  ;;  %v453_v13 = vmul.f32 %v452_v57, %v448_v27  ;;  %v478_v14 = vmul.f32 %v1416_v17, %v477_v4 }
  0x73   : > { %v387_v10 = vmul.f32 %v386_v59, %v385_v2  ;;  %v409_v12 = vadd.f32 %v408_v3, %v400_v60  ;;  %v435_v15 = vmul.f32 0.3, %v434_v7  ;;  %v461_v18 = vmul.f32 %v460_v8, %v455_v38 }
  0x74   : > { %v486_v19 = vmul.f32 %v485_v9, %v482_v35  ;;  %v454_v22 = vmul.f32 0.7, %v453_v13  ;;  %v479_v23 = vmul.f32 %v478_v14, %v474_v53  ;;  %v530_v16 = vand.u32 2147483647, %v1429_v47 }
  0x75   : > { %v413_v11 = vmul.f32 %v864_v5, %v409_v12  ;;  %v436_v24 = vadd.f32 %v435_v15, %v427_v6  ;;  %v462_v25 = vmul.f32 0.3, %v461_v18  ;;  %v529_v33 = vmul.f32 %v528_v20, %v1429_v47 }
  0x76   : > { %v487_v26 = vmul.f32 %v486_v19, %v481_v39  ;;  %v480_v27 = vmul.f32 0.7, %v479_v23  ;;  %v882_v34 = vadd.f32 -0.5, %v530_v16  ;;  %v556_v35 = vmul.f32 0.5, %v554_v56 }
  0x77   : > { %v414_v28 = vadd.f32 %v413_v11, %v387_v10  ;;  %v440_v30 = vmul.f32 %v867_v21, %v436_v24  ;;  %v463_v17 = vadd.f32 %v462_v25, %v454_v22  ;;  %v558_v36 = vand.u32 2147483647, %v554_v56 }
  0x78   : > { %v488_v31 = vmul.f32 0.3, %v487_v26  ;;  %v532_v39 = vsel %vm527_vm6, %v529_v33, %v882_v34  ;;  %v557_v43 = vmul.f32 %v556_v35, %v554_v56  ;;  %v1186_v55 = vmov 0.0  }
  0x79   : > { %v441_v37 = vadd.f32 %v440_v30, %v414_v28  ;;  %v466_v38 = vmul.f32 %v870_v29, %v463_v17  ;;  %v888_v44 = vadd.f32 -0.5, %v558_v36  ;;  %v533_v49 = vmul.f32 %v532_v39, %v1369_v0  ;;  %340 = vst.msk [vmem:[%s1454_s7] sm:$0x1] %vm339_vm8, %v1186_v55 }
  0x7a   : > { %v489_v40 = vadd.f32 %v488_v31, %v480_v27 }
  0x7b   : > { %v467_v41 = vadd.f32 %v466_v38, %v441_v37  ;;  %v560_v50 = vsel %vm555_vm7, %v557_v43, %v888_v44  ;;  %v614_v53 = vsel %vm563_vm0, %v533_v49, 0.0 }
  0x7c   : > { %v492_v42 = vmul.f32 %v873_v32, %v489_v40  ;;  %v561_v54 = vmul.f32 %v560_v50, %v1369_v0 }
  0x7e   : > { %v493_v46 = vadd.f32 %v492_v42, %v467_v41  ;;  %v634_v47 = vsel %vm563_vm0, %v561_v54, 0.0 }
  0x80   : > { %v494_v48 = vsub.f32 0.0, %v493_v46 }
  0x82   : > { %v584_v52 = vsel %vm563_vm0, %v494_v48, 0.0  ;;  %v652_v48 = vlaneseq }
  0x83   : > { %585 = vadd.xlane.f32.xlu1 %v584_v52 }
  0x84   : > { %vm654_vm9 = vcmp.lt.s32.totalorder %v652_v48, 1  ;;  %vm657_vm10 = vcmp.lt.s32.totalorder %v652_v48, 2  ;;  %vm660_vm11 = vcmp.lt.s32.totalorder %v652_v48, 3  ;;  %vm663_vm12 = vcmp.lt.s32.totalorder %v652_v48, 4 }
  0x85   : > { %vm666_vm13 = vcmp.lt.s32.totalorder %v652_v48, 5  ;;  %vm669_vm14 = vcmp.lt.s32.totalorder %v652_v48, 6  ;;  %vm672_vm15 = vcmp.lt.s32.totalorder %v652_v48, 7 }
  0x87   : > { %615 = vadd.xlane.f32.xlu1 %v614_v53 }
  0x8b   : > { %635 = vadd.xlane.f32.xlu1 %v634_v47 }
  0xe1   : > { %v566_v45 = vpop.xlane.xlu0 %565 }
  0xe2   : > { %v567_v51 = vrot.slane %v566_v45, 4 }
  0xe4   : > { %v568_v56 = vadd.f32 %v567_v51, %v566_v45 }
  0xe5   : > { %v576_v58 = vpop.xlane.xlu0 %575 }
  0xe6   : > { %v569_v59 = vrot.slane %v568_v56, 2  ;;  %v577_v60 = vrot.slane %v576_v58, 4  ;;  %v596_v5 = vpop.xlane.xlu1 %595 }
  0xe7   : > { %v597_v6 = vrot.slane %v596_v5, 4 }
  0xe8   : > { %v578_v61 = vadd.f32 %v577_v60, %v576_v58  ;;  %v570_v62 = vadd.f32 %v569_v59, %v568_v56  ;;  %v675_v60 = vld [vmem:[%s1454_s7] sm:$0x1] }
  0xe9   : > { %v606_v4 = vpop.xlane.xlu0 %605  ;;  %v598_v9 = vadd.f32 %v597_v6, %v596_v5 }
  0xea   : > { %v579_v0 = vrot.slane %v578_v61, 2  ;;  %v571_v63 = vrot.slane %v570_v62, 1  ;;  %v607_v7 = vrot.slane %v606_v4, 4 }
  0xeb   : > { %v599_v13 = vrot.slane %v598_v9, 2 }
  0xec   : > { %v572_v1 = vadd.f32 %v571_v63, %v570_v62  ;;  %v580_v2 = vadd.f32 %v579_v0, %v578_v61  ;;  %v608_v12 = vadd.f32 %v607_v7, %v606_v4 }
  0xed   : > { %v600_v22 = vadd.f32 %v599_v13, %v598_v9 }
  0xee   : > { %900 = vpush %v572_v1  ;;  %v581_v3 = vrot.slane %v580_v2, 1  ;;  %v609_v18 = vrot.slane %v608_v12, 2 }
  0xef   : > { %v601_v27 = vrot.slane %v600_v22, 1 }
  0xf0   : > { %v582_v57 = vadd.f32 %v581_v3, %v580_v2  ;;  %v610_v24 = vadd.f32 %v609_v18, %v608_v12 }
  0xf1   : > { %v626_v8 = vpop.xlane.xlu0 %625  ;;  %v602_v36 = vadd.f32 %v601_v27, %v600_v22 }
  0xf2   : > { %902 = vpush %v582_v57  ;;  %v627_v10 = vrot.slane %v626_v8, 4  ;;  %v611_v32 = vrot.slane %v610_v24, 1 }
  0xf4   : > { %v628_v15 = vadd.f32 %v627_v10, %v626_v8  ;;  %v612_v40 = vadd.f32 %v611_v32, %v610_v24 }
  0xf6   : > { %v629_v11 = vrot.slane %v628_v15, 2 }
  0xf8   : > { %v630_v28 = vadd.f32 %v629_v11, %v628_v15 }
  0xfa   : > { %v631_v37 = vrot.slane %v630_v28, 1 }
  0xfc   : > { %v632_v43 = vadd.f32 %v631_v37, %v630_v28 }
 0x10c   : > { %v586_v14 = vpop.xlane.xlu1 %585 }
 0x10d   : > { %v587_v19 = vrot.slane %v586_v14, 4 }
 0x10f   : > { %v588_v20 = vadd.f32 %v587_v19, %v586_v14 }
 0x110   : > { %v616_v21 = vpop.xlane.xlu1 %615 }
 0x111   : > { %v589_v23 = vrot.slane %v588_v20, 2  ;;  %v617_v16 = vrot.slane %v616_v21, 4 }
 0x113   : > { %v618_v25 = vadd.f32 %v617_v16, %v616_v21  ;;  %v590_v26 = vadd.f32 %v589_v23, %v588_v20 }
 0x114   : > { %v636_v29 = vpop.xlane.xlu1 %635 }
 0x115   : > { %v619_v30 = vrot.slane %v618_v25, 2  ;;  %v637_v17 = vrot.slane %v636_v29, 4  ;;  %v591_v31 = vrot.slane %v590_v26, 1 }
 0x117   : > { %v638_v33 = vadd.f32 %v637_v17, %v636_v29  ;;  %v592_v34 = vadd.f32 %v591_v31, %v590_v26  ;;  %v620_v35 = vadd.f32 %v619_v30, %v618_v25 }
 0x119   : > { %v639_v38 = vrot.slane %v638_v33, 2  ;;  %904 = vpush %v592_v34  ;;  %v621_v41 = vrot.slane %v620_v35, 1 }
 0x11a   : > { %906 = vpush %v602_v36 }
 0x11b   : > { %v640_v42 = vadd.f32 %v639_v38, %v638_v33  ;;  %908 = vpush %v612_v40  ;;  %v622_v39 = vadd.f32 %v621_v41, %v620_v35 }
 0x11d   : > { %910 = vpush %v622_v39  ;;  %v641_v44 = vrot.slane %v640_v42, 1 }
 0x11e   : > { %912 = vpush %v632_v43 }
 0x11f   : > { %v642_v46 = vadd.f32 %v641_v44, %v640_v42  ;;  %s901_s23 = spop %900 }
 0x120   : > { %v644_v49 = vstv %s901_s23 }
 0x121   : > { %914 = vpush %v642_v46 }
 0x123   : > { %s903_s29 = spop %902 }
 0x124   : > { %v645_v50 = vstv %s903_s29 }
 0x125   : > { %v656_v52 = vsel %vm654_vm9, %v644_v49, %v645_v50 }
 0x14a   : > { %s905_s28 = spop %904 }
 0x14b   : > { %v646_v53 = vstv %s905_s28  ;;  %s907_s30 = spop %906 }
 0x14c   : > { %v659_v54 = vsel %vm657_vm10, %v656_v52, %v646_v53  ;;  %v647_v47 = vstv %s907_s30  ;;  %s909_s9 = spop %908 }
 0x14d   : > { %v662_v55 = vsel %vm660_vm11, %v659_v54, %v647_v47  ;;  %v648_v45 = vstv %s909_s9 }
 0x14e   : > { %v665_v51 = vsel %vm663_vm12, %v662_v55, %v648_v45  ;;  %s911_s19 = spop %910 }
 0x14f   : > { %v649_v56 = vstv %s911_s19  ;;  %s913_s22 = spop %912 }
 0x150   : > { %v668_v58 = vsel %vm666_vm13, %v665_v51, %v649_v56  ;;  %v650_v59 = vstv %s913_s22 }
 0x151   : > { %v671_v61 = vsel %vm669_vm14, %v668_v58, %v650_v59 }
 0x152   : > { %s915_s14 = spop %914 }
 0x153   : > { %v651_v62 = vstv %s915_s14 }
 0x154   : > { %v674_v0 = vsel %vm672_vm15, %v671_v61, %v651_v62 }
 0x155   : > { %v676_v63 = vadd.f32 %v675_v60, %v674_v0 }
 0x157   : > { %678 = vst.msk [vmem:[%s1454_s7] sm:$0x1] %vm339_vm8, %v676_v63 }
 0x158   : > { %1108 = shalt.err (!%p1105_p4)
}
 0x159   : > { %s1109_s18 = scalar_lea.hbm %s692_s26, 16  ;;  %s1113_s7 = scalar_lea.hbm %s1505_s3, 32 }
 0x15a   : > { %p1110_p1 = scmp.ne.s32.totalorder %s692_s26, %s1109_s18  ;;  %p1114_p6 = scmp.lt.s32.totalorder %s692_s26, %s1505_s3 }
 0x15b   : > { %p1115_p7 = scmp.lt.s32.totalorder %s1113_s7, %s1109_s18 }
 0x15c   : > { %p1111_p2 = pnand %p1110_p1, %p1263_p9 }
 0x15d   : > { %p1116_p8 = por %p1115_p7, %p1114_p6 }
 0x15e   : > { %p1112_p5 = pneg %p1111_p2 }
 0x160   : > { %p1117_p0 = pnand %p1116_p8, %p1112_p5 }
 0x162   : > { %1120 = shalt.err (!%p1117_p0)
}
 0x163   : > { %922 = dma.vmem_to_hbm [thread:$0]  (%p1263_p9), %s695_s6, 16, %s692_s26, %s680_s21  }
 0x164 PF: > { %s706_s28 = sand.u32 1, %s1159_s12   ;;  %p1522_p3 = scmp.ge.s32.totalorder %s1179_s17, 2 }
 0x165   : > { %s707_s30 = scalar_lea.sflag [#allocation4], %s706_s28 }
 0x166   : > { %p935_p12 = pnand %p1522_p3, %p1270_p11 }
 0x168   : > { %p936_p10 = pneg %p935_p12 }
 0x16a   : > { %1154 = dma.done.wait (%p936_p10), %s707_s30, 16  }
 0x16b   : > { %1156 = vsyncadd (%p936_p10), %s707_s30, 4294967280  ;;  %s22_s17 = sadd.s32 1, %s1179_s17   ;;  %s1523_s9 = sld [smem:[#allocation12_spill]] }
 0x16c   : > { %p19_p13 = scmp.ge.s32.totalorder %s22_s17, 4   ;;  %s1524_s14 = sld [smem:[#allocation14_spill]] }
 0x16d   : > { %s1525_s25 = sld [smem:[#allocation13_spill]]  ;;  %s1526_s12 = smov %s1163_s13 }
 0x16e   : > { %s1528_s15 = smov %s1175_s16 }
 0x16f   :  { %21 = sbr.rel (!%p19_p13) target bundleno = 10 (0xa), region = 131 }
 0x171   : > { %s1527_s13 = smov %s1523_s9 }
 0x173   : > { %s1529_s16 = smov %s1525_s25 }
 0x174   :  { %711 = vsyncpa [#allocation3], 1 }
 0x175   :  { %713 = vsyncpa [#allocation3 + $0x1], 1 }
 0x176   :  { %714 = vsyncpa [#allocation6], 1 }
 0x177   :  { %716 = vsyncpa [#allocation6 + $0x1], 1 }
 0x178   :  { %717 = vsyncpa [#allocation4], 1 }
 0x179   :  { %719 = vsyncpa [#allocation4 + $0x1], 1 }

</bundles_post_ra>
